<compile_context>
chip_gen: v7x
topology: tpu7x:2x2x1
jax: 0.10.0
libtpu: 0.0.40
codegen_flags: <defaults>
</compile_context>

<pallas_src>
import jax
import jax.numpy as jnp
from jax import lax
from jax.experimental import pallas as pl
from jax.experimental.pallas import tpu as pltpu


def char_rnn_kernel(ids_ref, h0_ref, wih_ref, whh_ref, brnn_ref,
                    wfc_ref, bfc_ref,
                    out_ref, hn_ref):
    """Single-invocation kernel: one-hot build + full RNN recurrence + final FC.

    ids_ref  : (T*B, 1) int32  time-major token ids (row = t*B + b)
    h0_ref   : (B, H)   f32    initial hidden state
    wih_ref  : (V, H)   bf16   input->hidden weight (pre-transposed)
    whh_ref  : (H, H)   bf16   hidden->hidden weight (pre-transposed)
    brnn_ref : (1, H)   f32    b_ih + b_hh
    wfc_ref  : (H, V)   bf16   fc weight (pre-transposed)
    bfc_ref  : (1, V)   f32    fc bias
    out_ref  : (B, V)   f32    logits for the LAST time step
    hn_ref   : (B, H)   f32    final hidden state
    """
    TB = ids_ref.shape[0]
    B, H = h0_ref.shape
    V = wih_ref.shape[0]
    T = TB // B

    # --- One-hot built in-kernel (no (B,T,V) array in HBM, no wrapper one_hot op).
    ids = ids_ref[...]                                           # (T*B, 1) int32
    iota_v = lax.broadcasted_iota(jnp.int32, (TB, V), 1)         # lane iota
    onehot = (iota_v == ids).astype(jnp.bfloat16)                # (T*B, V), exact 0/1

    # --- Hoisted input projection: one well-shaped MXU matmul + bias broadcast,
    #     off the serial dependency chain. bf16 operands, f32 accumulation.
    pre_x = (jnp.dot(onehot, wih_ref[...],
                     preferred_element_type=jnp.float32)
             + brnn_ref[...])                                    # (T*B, H) f32

    # Bind the loop-invariant recurrent weight once (already bf16).
    # TODO(synk): replace the per-step jnp.dot below with
    # pltpu.matmul_push_rhs(whh, ...) once + matmul_acc_lhs/matmul_pop per step
    # if Mosaic does not already keep this RHS latched across the unrolled loop.
    whh = whh_ref[...]                                           # (H, H) bf16

    # --- Fully unrolled recurrence (T static); h stays resident in vregs, f32.
    h = h0_ref[...]                                              # (B, H) f32
    for t in range(T):
        r = jnp.dot(h.astype(jnp.bfloat16), whh,
                    preferred_element_type=jnp.float32)          # (B, H) f32
        h = jnp.tanh(pre_x[t * B:(t + 1) * B, :] + r)            # f32 VPU/EUP

    hn_ref[...] = h
    out_ref[...] = (jnp.dot(h.astype(jnp.bfloat16), wfc_ref[...],
                            preferred_element_type=jnp.float32)
                    + bfc_ref[...])


def char_rnn_forward(token_ids, hidden, kparams):
    """token_ids: (B, T) int32, hidden: (1, B, H) f32, kparams from prepare_params.

    Returns (logits (B, V) f32, hidden (1, B, H) f32)."""
    B, T = token_ids.shape
    V, H = kparams["w_ih_t"].shape

    # Only per-call plumbing left: time-major flatten of the tiny (B,T) id matrix.
    ids_tm = jnp.transpose(token_ids).reshape(T * B, 1)          # (T*B, 1) int32
    h0 = hidden[0]                                               # (B, H)

    def full(shape):
        return pl.BlockSpec(shape, lambda i, _n=len(shape): (0,) * _n)

    out, hn = pl.pallas_call(
        char_rnn_kernel,
        grid=(1,),
        out_shape=(jax.ShapeDtypeStruct((B, V), jnp.float32),
                   jax.ShapeDtypeStruct((B, H), jnp.float32)),
        in_specs=[full((T * B, 1)), full((B, H)), full((V, H)), full((H, H)),
                  full((1, H)), full((H, V)), full((1, V))],
        out_specs=(full((B, V)), full((B, H))),
        compiler_params=pltpu.CompilerParams(
            dimension_semantics=("arbitrary",)),
    )(ids_tm, h0, kparams["w_ih_t"], kparams["w_hh_t"], kparams["b_rnn"],
      kparams["w_fc_t"], kparams["b_fc"])

    return out, hn[None]                                         # (B,V), (1,B,H)


def prepare_params(params):
    """One-time (init-time) layout prep: transpose, fold biases, cast MXU operands
    to bf16. Keeps per-call wrapper free of transpose/reshape/cast ops."""
    H = params["w_hh"].shape[0]
    V = params["w_fc"].shape[0]
    return {
        "w_ih_t": params["w_ih"].T.astype(jnp.bfloat16),   # (V, H)
        "w_hh_t": params["w_hh"].T.astype(jnp.bfloat16),   # (H, H)
        "w_fc_t": params["w_fc"].T.astype(jnp.bfloat16),   # (H, V)
        "b_rnn": (params["b_ih"] + params["b_hh"]).reshape(1, H).astype(jnp.float32),
        "b_fc": params["b_fc"].reshape(1, V).astype(jnp.float32),
    }


def char_rnn_reference(token_ids, hidden, params, vocab_size,
                       matmul_dtype=jnp.float32):
    """Pure-JAX reference matching PyTorch nn.RNN(batch_first=True) + Linear.
    matmul_dtype=bf16 reproduces the kernel's bf16-operand / f32-accumulate dots."""
    x = jax.nn.one_hot(token_ids, vocab_size, dtype=jnp.float32)   # (B, T, V)
    h = hidden[0]
    b = params["b_ih"] + params["b_hh"]
    w_ih_t = params["w_ih"].T.astype(matmul_dtype)
    w_hh_t = params["w_hh"].T.astype(matmul_dtype)
    w_fc_t = params["w_fc"].T.astype(matmul_dtype)

    def step(h, xt):
        pre_x = jnp.dot(xt.astype(matmul_dtype), w_ih_t,
                        preferred_element_type=jnp.float32) + b
        pre_h = jnp.dot(h.astype(matmul_dtype), w_hh_t,
                        preferred_element_type=jnp.float32)
        h_new = jnp.tanh(pre_x + pre_h)
        return h_new, None

    h_final, _ = lax.scan(step, h, jnp.transpose(x, (1, 0, 2)))
    logits = jnp.dot(h_final.astype(matmul_dtype), w_fc_t,
                     preferred_element_type=jnp.float32) + params["b_fc"]
    return logits, h_final[None]


def init_params(key, vocab_size, hidden_size):
    """Deterministic init mirroring PyTorch nn.RNN / nn.Linear shapes (f32)."""
    k_rnn = 1.0 / jnp.sqrt(hidden_size)
    k_fc = 1.0 / jnp.sqrt(hidden_size)
    ks = jax.random.split(key, 6)
    return {
        "w_ih": jax.random.uniform(ks[0], (hidden_size, vocab_size),
                                   jnp.float32, -k_rnn, k_rnn),
        "w_hh": jax.random.uniform(ks[1], (hidden_size, hidden_size),
                                   jnp.float32, -k_rnn, k_rnn),
        "b_ih": jax.random.uniform(ks[2], (hidden_size,),
                                   jnp.float32, -k_rnn, k_rnn),
        "b_hh": jax.random.uniform(ks[3], (hidden_size,),
                                   jnp.float32, -k_rnn, k_rnn),
        "w_fc": jax.random.uniform(ks[4], (vocab_size, hidden_size),
                                   jnp.float32, -k_fc, k_fc),
        "b_fc": jax.random.uniform(ks[5], (vocab_size,),
                                   jnp.float32, -k_fc, k_fc),
    }


if __name__ == "__main__":
    B, T, V, H = 8, 8, 128, 128      # batch, seq, vocab_size, hidden_size

    key = jax.random.PRNGKey(0)
    k_ids, k_p = jax.random.split(key)
    token_ids = jax.random.randint(k_ids, (B, T), 0, V, dtype=jnp.int32)
    hidden0 = jnp.zeros((1, B, H), jnp.float32)        # init_hidden(batch_size)
    params = init_params(k_p, V, H)
    kparams = prepare_params(params)                   # one-time layout prep

    logits, hidden_n = jax.block_until_ready(
        char_rnn_forward(token_ids, hidden0, kparams))

    assert logits.shape == (B, V) and hidden_n.shape == (1, B, H)

    # 1) Tight check vs. a reference that uses the same bf16-operand MXU dots.
    ref_bf_logits, ref_bf_hidden = char_rnn_reference(
        token_ids, hidden0, params, V, matmul_dtype=jnp.bfloat16)
    assert jnp.allclose(logits, ref_bf_logits, atol=1e-3, rtol=1e-3)
    assert jnp.allclose(hidden_n, ref_bf_hidden, atol=1e-3, rtol=1e-3)

    # 2) Sanity check vs. the pure-f32 PyTorch-semantics reference
    #    (tolerance reflects bf16 MXU operands over 8 recurrent steps).
    ref_f32_logits, ref_f32_hidden = char_rnn_reference(
        token_ids, hidden0, params, V, matmul_dtype=jnp.float32)
    assert jnp.allclose(logits, ref_f32_logits, atol=2e-2, rtol=2e-2)
    assert jnp.allclose(hidden_n, ref_f32_hidden, atol=2e-2, rtol=2e-2)

    print("KERNEL_OK")
</pallas_src>

<mosaic_0001>
module attributes {stable_mosaic.version = 11 : i64} {
  func.func @char_rnn_kernel(%arg0: i32, %arg1: memref<64x1xi32, #tpu.memory_space<vmem>>, %arg2: memref<8x128xf32, #tpu.memory_space<vmem>>, %arg3: memref<128x128xbf16, #tpu.memory_space<vmem>>, %arg4: memref<128x128xbf16, #tpu.memory_space<vmem>>, %arg5: memref<1x128xf32, #tpu.memory_space<vmem>>, %arg6: memref<128x128xbf16, #tpu.memory_space<vmem>>, %arg7: memref<1x128xf32, #tpu.memory_space<vmem>>, %arg8: memref<8x128xf32, #tpu.memory_space<vmem>>, %arg9: memref<8x128xf32, #tpu.memory_space<vmem>>) attributes {dimension_semantics = [#tpu.dimension_semantics<arbitrary>], iteration_bounds = array<i64: 1>, scalar_prefetch = 0 : i64, scratch_operands = 0 : i64, tpu.core_type = #tpu.core_type<tc>, window_params = [{pipeline_mode = #tpu.pipeline_mode<synchronous>, transform_indices = @transform_0, window_bounds = array<i64: 64, 1>}, {pipeline_mode = #tpu.pipeline_mode<synchronous>, transform_indices = @transform_1, window_bounds = array<i64: 8, 128>}, {pipeline_mode = #tpu.pipeline_mode<synchronous>, transform_indices = @transform_2, window_bounds = array<i64: 128, 128>}, {pipeline_mode = #tpu.pipeline_mode<synchronous>, transform_indices = @transform_3, window_bounds = array<i64: 128, 128>}, {pipeline_mode = #tpu.pipeline_mode<synchronous>, transform_indices = @transform_4, window_bounds = array<i64: 1, 128>}, {pipeline_mode = #tpu.pipeline_mode<synchronous>, transform_indices = @transform_5, window_bounds = array<i64: 128, 128>}, {pipeline_mode = #tpu.pipeline_mode<synchronous>, transform_indices = @transform_6, window_bounds = array<i64: 1, 128>}, {pipeline_mode = #tpu.pipeline_mode<synchronous>, transform_indices = @transform_7, window_bounds = array<i64: 8, 128>}, {pipeline_mode = #tpu.pipeline_mode<synchronous>, transform_indices = @transform_8, window_bounds = array<i64: 8, 128>}]} {
    %c0 = arith.constant 0 : index
    %c0_0 = arith.constant 0 : index
    %0 = vector.load %arg1[%c0, %c0_0] : memref<64x1xi32, #tpu.memory_space<vmem>>, vector<64x1xi32>
    %1 = tpu.iota {dimensions = array<i32: 1>} : vector<64x128xi32>
    %2 = vector.broadcast %0 : vector<64x1xi32> to vector<64x128xi32>
    %3 = arith.cmpi eq, %1, %2 : vector<64x128xi32>
    %4 = arith.extui %3 : vector<64x128xi1> to vector<64x128xi32>
    %5 = arith.sitofp %4 : vector<64x128xi32> to vector<64x128xf32>
    %6 = arith.truncf %5 : vector<64x128xf32> to vector<64x128xbf16>
    %c0_1 = arith.constant 0 : index
    %c0_2 = arith.constant 0 : index
    %7 = vector.load %arg3[%c0_1, %c0_2] : memref<128x128xbf16, #tpu.memory_space<vmem>>, vector<128x128xbf16>
    %cst = arith.constant dense<0.000000e+00> : vector<64x128xf32>
    %8 = tpu.matmul %6, %7, %cst {dimension_numbers = #tpu.dot_dimension_numbers<[1], [0], [0], [1], [0, 0, 1, 1], [], []>} : vector<64x128xbf16>, vector<128x128xbf16>, vector<64x128xf32> -> vector<64x128xf32>
    %c0_3 = arith.constant 0 : index
    %c0_4 = arith.constant 0 : index
    %9 = vector.load %arg5[%c0_3, %c0_4] : memref<1x128xf32, #tpu.memory_space<vmem>>, vector<1x128xf32>
    %10 = vector.broadcast %9 : vector<1x128xf32> to vector<64x128xf32>
    %11 = arith.addf %8, %10 : vector<64x128xf32>
    %c0_5 = arith.constant 0 : index
    %c0_6 = arith.constant 0 : index
    %12 = vector.load %arg4[%c0_5, %c0_6] : memref<128x128xbf16, #tpu.memory_space<vmem>>, vector<128x128xbf16>
    %c0_7 = arith.constant 0 : index
    %c0_8 = arith.constant 0 : index
    %13 = vector.load %arg2[%c0_7, %c0_8] : memref<8x128xf32, #tpu.memory_space<vmem>>, vector<8x128xf32>
    %14 = arith.truncf %13 : vector<8x128xf32> to vector<8x128xbf16>
    %cst_9 = arith.constant dense<0.000000e+00> : vector<8x128xf32>
    %15 = tpu.matmul %14, %12, %cst_9 {dimension_numbers = #tpu.dot_dimension_numbers<[1], [0], [0], [1], [0, 0, 1, 1], [], []>} : vector<8x128xbf16>, vector<128x128xbf16>, vector<8x128xf32> -> vector<8x128xf32>
    %16 = vector.extract_strided_slice %11 {offsets = [0, 0], sizes = [8, 128], strides = [1, 1]} : vector<64x128xf32> to vector<8x128xf32>
    %17 = arith.addf %16, %15 : vector<8x128xf32>
    %18 = math.tanh %17 : vector<8x128xf32>
    %19 = arith.truncf %18 : vector<8x128xf32> to vector<8x128xbf16>
    %cst_10 = arith.constant dense<0.000000e+00> : vector<8x128xf32>
    %20 = tpu.matmul %19, %12, %cst_10 {dimension_numbers = #tpu.dot_dimension_numbers<[1], [0], [0], [1], [0, 0, 1, 1], [], []>} : vector<8x128xbf16>, vector<128x128xbf16>, vector<8x128xf32> -> vector<8x128xf32>
    %21 = vector.extract_strided_slice %11 {offsets = [8, 0], sizes = [8, 128], strides = [1, 1]} : vector<64x128xf32> to vector<8x128xf32>
    %22 = arith.addf %21, %20 : vector<8x128xf32>
    %23 = math.tanh %22 : vector<8x128xf32>
    %24 = arith.truncf %23 : vector<8x128xf32> to vector<8x128xbf16>
    %cst_11 = arith.constant dense<0.000000e+00> : vector<8x128xf32>
    %25 = tpu.matmul %24, %12, %cst_11 {dimension_numbers = #tpu.dot_dimension_numbers<[1], [0], [0], [1], [0, 0, 1, 1], [], []>} : vector<8x128xbf16>, vector<128x128xbf16>, vector<8x128xf32> -> vector<8x128xf32>
    %26 = vector.extract_strided_slice %11 {offsets = [16, 0], sizes = [8, 128], strides = [1, 1]} : vector<64x128xf32> to vector<8x128xf32>
    %27 = arith.addf %26, %25 : vector<8x128xf32>
    %28 = math.tanh %27 : vector<8x128xf32>
    %29 = arith.truncf %28 : vector<8x128xf32> to vector<8x128xbf16>
    %cst_12 = arith.constant dense<0.000000e+00> : vector<8x128xf32>
    %30 = tpu.matmul %29, %12, %cst_12 {dimension_numbers = #tpu.dot_dimension_numbers<[1], [0], [0], [1], [0, 0, 1, 1], [], []>} : vector<8x128xbf16>, vector<128x128xbf16>, vector<8x128xf32> -> vector<8x128xf32>
    %31 = vector.extract_strided_slice %11 {offsets = [24, 0], sizes = [8, 128], strides = [1, 1]} : vector<64x128xf32> to vector<8x128xf32>
    %32 = arith.addf %31, %30 : vector<8x128xf32>
    %33 = math.tanh %32 : vector<8x128xf32>
    %34 = arith.truncf %33 : vector<8x128xf32> to vector<8x128xbf16>
    %cst_13 = arith.constant dense<0.000000e+00> : vector<8x128xf32>
    %35 = tpu.matmul %34, %12, %cst_13 {dimension_numbers = #tpu.dot_dimension_numbers<[1], [0], [0], [1], [0, 0, 1, 1], [], []>} : vector<8x128xbf16>, vector<128x128xbf16>, vector<8x128xf32> -> vector<8x128xf32>
    %36 = vector.extract_strided_slice %11 {offsets = [32, 0], sizes = [8, 128], strides = [1, 1]} : vector<64x128xf32> to vector<8x128xf32>
    %37 = arith.addf %36, %35 : vector<8x128xf32>
    %38 = math.tanh %37 : vector<8x128xf32>
    %39 = arith.truncf %38 : vector<8x128xf32> to vector<8x128xbf16>
    %cst_14 = arith.constant dense<0.000000e+00> : vector<8x128xf32>
    %40 = tpu.matmul %39, %12, %cst_14 {dimension_numbers = #tpu.dot_dimension_numbers<[1], [0], [0], [1], [0, 0, 1, 1], [], []>} : vector<8x128xbf16>, vector<128x128xbf16>, vector<8x128xf32> -> vector<8x128xf32>
    %41 = vector.extract_strided_slice %11 {offsets = [40, 0], sizes = [8, 128], strides = [1, 1]} : vector<64x128xf32> to vector<8x128xf32>
    %42 = arith.addf %41, %40 : vector<8x128xf32>
    %43 = math.tanh %42 : vector<8x128xf32>
    %44 = arith.truncf %43 : vector<8x128xf32> to vector<8x128xbf16>
    %cst_15 = arith.constant dense<0.000000e+00> : vector<8x128xf32>
    %45 = tpu.matmul %44, %12, %cst_15 {dimension_numbers = #tpu.dot_dimension_numbers<[1], [0], [0], [1], [0, 0, 1, 1], [], []>} : vector<8x128xbf16>, vector<128x128xbf16>, vector<8x128xf32> -> vector<8x128xf32>
    %46 = vector.extract_strided_slice %11 {offsets = [48, 0], sizes = [8, 128], strides = [1, 1]} : vector<64x128xf32> to vector<8x128xf32>
    %47 = arith.addf %46, %45 : vector<8x128xf32>
    %48 = math.tanh %47 : vector<8x128xf32>
    %49 = arith.truncf %48 : vector<8x128xf32> to vector<8x128xbf16>
    %cst_16 = arith.constant dense<0.000000e+00> : vector<8x128xf32>
    %50 = tpu.matmul %49, %12, %cst_16 {dimension_numbers = #tpu.dot_dimension_numbers<[1], [0], [0], [1], [0, 0, 1, 1], [], []>} : vector<8x128xbf16>, vector<128x128xbf16>, vector<8x128xf32> -> vector<8x128xf32>
    %51 = vector.extract_strided_slice %11 {offsets = [56, 0], sizes = [8, 128], strides = [1, 1]} : vector<64x128xf32> to vector<8x128xf32>
    %52 = arith.addf %51, %50 : vector<8x128xf32>
    %53 = math.tanh %52 : vector<8x128xf32>
    %c0_17 = arith.constant 0 : index
    %c0_18 = arith.constant 0 : index
    %54 = vector.load %arg9[%c0_17, %c0_18] : memref<8x128xf32, #tpu.memory_space<vmem>>, vector<8x128xf32>
    tpu.vector_store %arg9[%c0_17, %c0_18], %53 {strides = array<i32>} : memref<8x128xf32, #tpu.memory_space<vmem>>, vector<8x128xf32>,
    %55 = arith.truncf %53 : vector<8x128xf32> to vector<8x128xbf16>
    %c0_19 = arith.constant 0 : index
    %c0_20 = arith.constant 0 : index
    %56 = vector.load %arg6[%c0_19, %c0_20] : memref<128x128xbf16, #tpu.memory_space<vmem>>, vector<128x128xbf16>
    %cst_21 = arith.constant dense<0.000000e+00> : vector<8x128xf32>
    %57 = tpu.matmul %55, %56, %cst_21 {dimension_numbers = #tpu.dot_dimension_numbers<[1], [0], [0], [1], [0, 0, 1, 1], [], []>} : vector<8x128xbf16>, vector<128x128xbf16>, vector<8x128xf32> -> vector<8x128xf32>
    %c0_22 = arith.constant 0 : index
    %c0_23 = arith.constant 0 : index
    %58 = vector.load %arg7[%c0_22, %c0_23] : memref<1x128xf32, #tpu.memory_space<vmem>>, vector<1x128xf32>
    %59 = vector.broadcast %58 : vector<1x128xf32> to vector<8x128xf32>
    %60 = arith.addf %57, %59 : vector<8x128xf32>
    %c0_24 = arith.constant 0 : index
    %c0_25 = arith.constant 0 : index
    %61 = vector.load %arg8[%c0_24, %c0_25] : memref<8x128xf32, #tpu.memory_space<vmem>>, vector<8x128xf32>
    tpu.vector_store %arg8[%c0_24, %c0_25], %60 {strides = array<i32>} : memref<8x128xf32, #tpu.memory_space<vmem>>, vector<8x128xf32>,
    return
  }
  func.func @transform_0(%arg0: i32) -> (i32, i32) {
    %c0_i32 = arith.constant 0 : i32
    %c0_i32_0 = arith.constant 0 : i32
    %c0_i32_1 = arith.constant 0 : i32
    return %c0_i32, %c0_i32_0 : i32, i32
  }
  func.func @transform_1(%arg0: i32) -> (i32, i32) {
    %c0_i32 = arith.constant 0 : i32
    %c0_i32_0 = arith.constant 0 : i32
    %c0_i32_1 = arith.constant 0 : i32
    return %c0_i32, %c0_i32_0 : i32, i32
  }
  func.func @transform_2(%arg0: i32) -> (i32, i32) {
    %c0_i32 = arith.constant 0 : i32
    %c0_i32_0 = arith.constant 0 : i32
    %c0_i32_1 = arith.constant 0 : i32
    return %c0_i32, %c0_i32_0 : i32, i32
  }
  func.func @transform_3(%arg0: i32) -> (i32, i32) {
    %c0_i32 = arith.constant 0 : i32
    %c0_i32_0 = arith.constant 0 : i32
    %c0_i32_1 = arith.constant 0 : i32
    return %c0_i32, %c0_i32_0 : i32, i32
  }
  func.func @transform_4(%arg0: i32) -> (i32, i32) {
    %c0_i32 = arith.constant 0 : i32
    %c0_i32_0 = arith.constant 0 : i32
    %c0_i32_1 = arith.constant 0 : i32
    return %c0_i32, %c0_i32_0 : i32, i32
  }
  func.func @transform_5(%arg0: i32) -> (i32, i32) {
    %c0_i32 = arith.constant 0 : i32
    %c0_i32_0 = arith.constant 0 : i32
    %c0_i32_1 = arith.constant 0 : i32
    return %c0_i32, %c0_i32_0 : i32, i32
  }
  func.func @transform_6(%arg0: i32) -> (i32, i32) {
    %c0_i32 = arith.constant 0 : i32
    %c0_i32_0 = arith.constant 0 : i32
    %c0_i32_1 = arith.constant 0 : i32
    return %c0_i32, %c0_i32_0 : i32, i32
  }
  func.func @transform_7(%arg0: i32) -> (i32, i32) {
    %c0_i32 = arith.constant 0 : i32
    %c0_i32_0 = arith.constant 0 : i32
    %c0_i32_1 = arith.constant 0 : i32
    return %c0_i32, %c0_i32_0 : i32, i32
  }
  func.func @transform_8(%arg0: i32) -> (i32, i32) {
    %c0_i32 = arith.constant 0 : i32
    %c0_i32_0 = arith.constant 0 : i32
    %c0_i32_1 = arith.constant 0 : i32
    return %c0_i32, %c0_i32_0 : i32, i32
  }
}

</mosaic_0001>

<bundles_post_ra>
// kernel: tpu_custom_call.1
= control target key start
LH: loop header
LB: loop body
LE: loop exit
PB: predicated region body
PF: predicated region fallthrough
CT: control target
= control target key end

     0   :  { %14 = vsyncpa [#allocation3], 0  ;;  %s1645_s0 = inlined_call_operand.vmem [shape: s32[64,1], index: 0, kind: input, shape index: {}]   ;;  %s1646_s1 = inlined_call_operand.vmem [shape: f32[8,128], index: 1, kind: input, shape index: {}]   ;;  %s1647_s2 = inlined_call_operand.vmem [shape: bf16[128,128], index: 2, kind: input, shape index: {}]   ;;  %s1648_s3 = inlined_call_operand.hbm [shape: bf16[128,128], index: 3, kind: input, shape index: {}]   ;;  %s1649_s4 = inlined_call_operand.vmem [shape: f32[1,128], index: 4, kind: input, shape index: {}]   ;;  %s1650_s5 = inlined_call_operand.hbm [shape: bf16[128,128], index: 5, kind: input, shape index: {}]   ;;  %s1651_s6 = inlined_call_operand.vmem [shape: f32[1,128], index: 6, kind: input, shape index: {}]   ;;  %s1652_s7 = inlined_call_operand.hbm [shape: f32[8,128], index: 7, kind: output, shape index: {0}]   ;;  %s1653_s8 = inlined_call_operand.hbm [shape: f32[8,128], index: 8, kind: output, shape index: {1}]  }
   0x1   :  { %15 = vsyncpa [#allocation6], 0 }
   0x2   :  { %16 = vsyncpa [#allocation4], 0 }
   0x3   :  { %17 = vsyncpa [#allocation9], 0  ;;  %s1297_s27 = smov [#allocation2]   ;;  %s1201_s9 = scalar_lea.hbm %s1648_s3, 1024 }
   0x4   :  { %s29_s28 = sshll.u32 %s1297_s27, 4  ;;  %p1202_p0 = scmp.ne.s32.totalorder %s1648_s3, %s1201_s9  ;;  %s30_s28 = int_to_ptr.vmem [resolvable:$true] %s29_s28 }
   0x5   :  { %p1205_p1 = scmp.lt.u32.totalorder %s1201_s9, %s1648_s3 }
   0x7   :  { %p1207_p2 = pnand %p1205_p1, %p1202_p0 }
   0x9   :  { %1210 = shalt.err (!%p1207_p2)
}
   0xa   :  { %s1211_s14 = scalar_lea.vmem %s30_s28, 1024  ;;  %p1216_p4 = scmp.lt.s32.totalorder %s30_s28, %s30_s28 }
   0xb   :  { %p1212_p3 = scmp.ne.s32.totalorder %s30_s28, %s1211_s14  ;;  %p1217_p5 = scmp.lt.s32.totalorder %s1211_s14, %s1211_s14 }
   0xd   :  { %p1218_p6 = por %p1217_p5, %p1216_p4 }
   0xf   :  { %p1219_p7 = pnand %p1218_p6, %p1212_p3 }
  0x11   :  { %1222 = shalt.err (!%p1219_p7)
}
  0x12   :  { %s1298_s15 = smov 64   ;;  %s1299_s16 = smov 4  }
  0x13   :  { %35 = dma.hbm_to_vmem [thread:$0]  %s1648_s3, 1024, %s30_s28, [#allocation3], %s1298_s15, %s1298_s15, %s1299_s16  }
  0x14   :  { %s1300_s19 = smov [#allocation5]   ;;  %s1223_s23 = scalar_lea.hbm %s1650_s5, 1024 }
  0x15   :  { %s43_s20 = sshll.u32 %s1300_s19, 4  ;;  %p1224_p8 = scmp.ne.s32.totalorder %s1650_s5, %s1223_s23  ;;  %s44_s20 = int_to_ptr.vmem [resolvable:$true] %s43_s20 }
  0x16   :  { %p1227_p9 = scmp.lt.u32.totalorder %s1223_s23, %s1650_s5 }
  0x18   :  { %p1229_p10 = pnand %p1227_p9, %p1224_p8 }
  0x1a   :  { %1232 = shalt.err (!%p1229_p10)
}
  0x1b   :  { %s1233_s29 = scalar_lea.vmem %s44_s20, 1024  ;;  %p1238_p12 = scmp.lt.s32.totalorder %s44_s20, %s44_s20 }
  0x1c   :  { %p1234_p11 = scmp.ne.s32.totalorder %s44_s20, %s1233_s29  ;;  %p1239_p13 = scmp.lt.s32.totalorder %s1233_s29, %s1233_s29 }
  0x1e   :  { %p1240_p0 = por %p1239_p13, %p1238_p12 }
  0x20   :  { %p1241_p1 = pnand %p1240_p0, %p1234_p11 }
  0x22   :  { %1244 = shalt.err (!%p1241_p1)
}
  0x23   :  { %49 = dma.hbm_to_vmem [thread:$0]  %s1650_s5, 1024, %s44_s20, [#allocation6], %s1298_s15, %s1298_s15, %s1299_s16  }
  0x24   :  { %1289 = dma.done.wait [#allocation3], 1024  }
  0x25   :  { %1290 = vsyncadd [#allocation3], 4294966272 }
  0x26   :  { %1291 = dma.done.wait [#allocation6], 1024  }
  0x27   :  { %1292 = vsyncadd [#allocation6], 4294966272  ;;  %v1301_v0 = vmov 0   ;;  %v1302_v1 = vmov 0.0   ;;  %v61_v2 = vld [vmem:[%s1645_s0 + $0x10] sm:$0xff]  ;;  %v59_v3 = vld [vmem:[%s1645_s0] sm:$0xff]  ;;  %v67_v28 = vlaneseq }
  0x28   :  { %1160 = vset.pattern.permute.xlu1 %v1301_v0  ;;  %1159 = vset.pattern.permute.xlu0 %v1301_v0  ;;  %v62_v4 = vld [vmem:[%s1645_s0 + $0x18] sm:$0xff]  ;;  %v60_v5 = vld [vmem:[%s1645_s0 + $0x8] sm:$0xff]  ;;  %v1161_v6 = vld [vmem:[%s1647_s2] sm:$0xff]   ;;  %vm1303_vm0 = vmmov 0   ;;  %v1304_v34 = vmov 1.0|1.0  }
  0x29   :  { %969 = vmatprep.subr.bf16.mxu1 %v1302_v1  ;;  %76 = vperm.xlu1 %1160, %v61_v2   ;;  %v64_v7 = vld [vmem:[%s1645_s0 + $0x28] sm:$0xff]  ;;  %v63_v8 = vld [vmem:[%s1645_s0 + $0x20] sm:$0xff]  ;;  %v66_v12 = vld [vmem:[%s1645_s0 + $0x38] sm:$0xff]  ;;  %v68_v31 = vand.u32 127, %v67_v28 }
  0x2a   :  { %70 = vperm.xlu0 %1159, %v59_v3   ;;  %v1398_v9 = vld [vmem:[#allocation2] sm:$0xff]   ;;  %v1163_v10 = vld [vmem:[%s1647_s2 + $0x8] sm:$0xff]   ;;  %945 = vmatprep.subr.bf16.mxu0 %v1161_v6  ;;  %v1165_v13 = vld [vmem:[%s1647_s2 + $0x10] sm:$0xff]  }
  0x2b   :  { %970 = vmatpush3.bf16.msra.mxu1 %v1398_v9  ;;  %v1404_v11 = vld [vmem:[#allocation2 + $0x8] sm:$0xff]   ;;  %946 = vmatpush3.bf16.msra.mxu0 %v1161_v6  ;;  %v65_v14 = vld [vmem:[%s1645_s0 + $0x30] sm:$0xff]  ;;  %v1167_v16 = vld [vmem:[%s1647_s2 + $0x18] sm:$0xff]  }
  0x2c   :  { %971 = vmatprep.subr.bf16.mxu1 %v1302_v1  ;;  %947 = vmatprep.subr.bf16.mxu0 %v1163_v10  ;;  %v1419_v15 = vld [vmem:[#allocation2 + $0x10] sm:$0xff]   ;;  %v1426_v17 = vld [vmem:[#allocation2 + $0x18] sm:$0xff]   ;;  %v1169_v18 = vld [vmem:[%s1647_s2 + $0x20] sm:$0xff]  }
  0x2d   :  { %79 = vperm.xlu1 %1160, %v62_v4   ;;  %985 = vmatprep.mubr.msk.bf16.mxu1 %vm1303_vm0, %v1302_v1  ;;  %v1433_v19 = vld [vmem:[#allocation2 + $0x20] sm:$0xff]   ;;  %v1171_v20 = vld [vmem:[%s1647_s2 + $0x28] sm:$0xff]   ;;  %v1173_v22 = vld [vmem:[%s1647_s2 + $0x30] sm:$0xff]  }
  0x2e   :  { %73 = vperm.xlu0 %1159, %v60_v5   ;;  %v1439_v21 = vld [vmem:[#allocation2 + $0x28] sm:$0xff]   ;;  %v1447_v23 = vld [vmem:[#allocation2 + $0x30] sm:$0xff]   ;;  %v1175_v24 = vld [vmem:[%s1647_s2 + $0x38] sm:$0xff]  }
  0x2f   :  { %972 = vmatpush3.bf16.msra.mxu1 %v1404_v11  ;;  %948 = vmatpush3.bf16.msra.mxu0 %v1163_v10  ;;  %v1454_v25 = vld [vmem:[#allocation2 + $0x38] sm:$0xff]   ;;  %v273_v26 = vld [vmem:[%s1646_s1] sm:$0xff] }
  0x30   :  { %973 = vmatprep.subr.bf16.mxu1 %v1302_v1  ;;  %949 = vmatprep.subr.bf16.mxu0 %v1165_v13  ;;  %v274_v27 = vpack.c.bf16 %v273_v26, %v273_v26  ;;  %v818_v43 = vld [vmem:[%s1649_s4] ss:$0 sm:$0xff]  ;;  %s1305_s4 = smov [#allocation8]  }
  0x31   :  { %85 = vperm.xlu1 %1160, %v64_v7   ;;  %s796_s16 = sshll.u32 %s1305_s4, 4  ;;  %s797_s16 = int_to_ptr.vmem [resolvable:$true] %s796_s16 }
  0x32   :  { %82 = vperm.xlu0 %1159, %v63_v8   ;;  %s1245_s17 = scalar_lea.vmem %s797_s16, 128  ;;  %p1250_p3 = scmp.lt.s32.totalorder %s797_s16, %s797_s16 }
  0x33   :  { %974 = vmatpush3.bf16.msra.mxu1 %v1419_v15  ;;  %950 = vmatpush3.bf16.msra.mxu0 %v1165_v13  ;;  %p1246_p2 = scmp.ne.s32.totalorder %s797_s16, %s1245_s17  ;;  %p1251_p4 = scmp.lt.s32.totalorder %s1245_s17, %s1245_s17 }
  0x34   :  { %975 = vmatprep.subr.bf16.mxu1 %v1302_v1  ;;  %951 = vmatprep.subr.bf16.mxu0 %v1167_v16 }
  0x35   :  { %91 = vperm.xlu1 %1160, %v66_v12   ;;  %p1252_p5 = por %p1251_p4, %p1250_p3 }
  0x36   :  { %88 = vperm.xlu0 %1159, %v65_v14  }
  0x37   :  { %976 = vmatpush3.bf16.msra.mxu1 %v1426_v17  ;;  %952 = vmatpush3.bf16.msra.mxu0 %v1167_v16  ;;  %p1253_p6 = pnand %p1252_p5, %p1246_p2 }
  0x38   :  { %977 = vmatprep.subr.bf16.mxu1 %v1302_v1  ;;  %953 = vmatprep.subr.bf16.mxu0 %v1169_v18 }
  0x3b   :  { %978 = vmatpush3.bf16.msra.mxu1 %v1433_v19  ;;  %954 = vmatpush3.bf16.msra.mxu0 %v1169_v18 }
  0x3c   :  { %979 = vmatprep.subr.bf16.mxu1 %v1302_v1  ;;  %955 = vmatprep.subr.bf16.mxu0 %v1171_v20 }
  0x3f   :  { %980 = vmatpush3.bf16.msra.mxu1 %v1439_v21  ;;  %956 = vmatpush3.bf16.msra.mxu0 %v1171_v20 }
  0x40   :  { %981 = vmatprep.subr.bf16.mxu1 %v1302_v1  ;;  %957 = vmatprep.subr.bf16.mxu0 %v1173_v22 }
  0x43   :  { %982 = vmatpush3.bf16.msra.mxu1 %v1447_v23  ;;  %958 = vmatpush3.bf16.msra.mxu0 %v1173_v22 }
  0x44   :  { %983 = vmatprep.subr.bf16.mxu1 %v1302_v1  ;;  %959 = vmatprep.subr.bf16.mxu0 %v1175_v24 }
  0x47   :  { %984 = vmatpush3.bf16.msra.mxu1 %v1454_v25  ;;  %960 = vmatpush3.bf16.msra.mxu0 %v1175_v24 }
  0x48   :  { %1009 = vmatprep.subr.bf16.mxu1 %v1302_v1  ;;  %989 = vmatprep.subr.bf16.mxu0 %v1302_v1 }
  0x4a   :  { %986 = vmatmul.mubr.bf16.vlgmr.msra.gmra.mrb[0].mxu1 %v274_v27 }
  0x4b   :  { %1010 = vmatpush3.bf16.msra.mxu1 %v1398_v9  ;;  %1025 = vmatprep.mubr.msk.bf16.mxu1 %vm1303_vm0, %v1302_v1 }
  0x4c   :  { %1011 = vmatprep.subr.bf16.mxu1 %v1302_v1 }
  0x4f   :  { %1012 = vmatpush3.bf16.msra.mxu1 %v1404_v11 }
  0x50   :  { %1013 = vmatprep.subr.bf16.mxu1 %v1302_v1 }
  0x53   :  { %1014 = vmatpush3.bf16.msra.mxu1 %v1419_v15 }
  0x54   :  { %1015 = vmatprep.subr.bf16.mxu1 %v1302_v1 }
  0x57   :  { %1016 = vmatpush3.bf16.msra.mxu1 %v1426_v17 }
  0x58   :  { %1017 = vmatprep.subr.bf16.mxu1 %v1302_v1 }
  0x5b   :  { %1018 = vmatpush3.bf16.msra.mxu1 %v1433_v19 }
  0x5c   :  { %1019 = vmatprep.subr.bf16.mxu1 %v1302_v1 }
  0x5f   :  { %1020 = vmatpush3.bf16.msra.mxu1 %v1439_v21 }
  0x60   :  { %1021 = vmatprep.subr.bf16.mxu1 %v1302_v1 }
  0x63   :  { %1022 = vmatpush3.bf16.msra.mxu1 %v1447_v23 }
  0x64   :  { %1023 = vmatprep.subr.bf16.mxu1 %v1302_v1 }
  0x67   :  { %1024 = vmatpush3.bf16.msra.mxu1 %v1454_v25 }
  0x68   :  { %1049 = vmatprep.subr.bf16.mxu1 %v1302_v1 }
  0xa8   :  { %v77_v29 = vpop.permute.xlu1 %76 }
  0xa9   :  { %v71_v30 = vpop.permute.xlu0 %70  ;;  %vm95_vm1 = vcmp.eq.s32.totalorder %v68_v31, %v77_v29 }
  0xaa   :  { %vm93_vm4 = vcmp.eq.s32.totalorder %v68_v31, %v71_v30 }
  0xac   :  { %v80_v32 = vpop.permute.xlu1 %79 }
  0xad   :  { %v74_v33 = vpop.permute.xlu0 %73  ;;  %vm96_vm2 = vcmp.eq.s32.totalorder %v68_v31, %v80_v32 }
  0xae   :  { %vm94_vm3 = vcmp.eq.s32.totalorder %v68_v31, %v74_v33  ;;  %vm829_vm5 = vmpackc.low %vm96_vm2, %vm95_vm1 }
  0xaf   :  { %vm827_vm6 = vmpackc.low %vm94_vm3, %vm93_vm4 }
  0xb0   :  { %961 = vmatprep.mubr.msk.bf16.mxu0 %vm827_vm6, %v1304_v34  ;;  %v86_v35 = vpop.permute.xlu1 %85 }
  0xb1   :  { %v83_v36 = vpop.permute.xlu0 %82  ;;  %vm98_vm7 = vcmp.eq.s32.totalorder %v68_v31, %v86_v35  ;;  %962 = vmatmul.mubr.msk.bf16.vlgmr.msra.gmra.mrb[0].mxu0 %vm829_vm5, %v1304_v34 }
  0xb2   :  { %vm97_vm8 = vcmp.eq.s32.totalorder %v68_v31, %v83_v36  ;;  %990 = vmatpush3.bf16.msra.mxu0 %v1398_v9 }
  0xb3   :  { %vm831_vm9 = vmpackc.low %vm98_vm7, %vm97_vm8  ;;  %991 = vmatprep.subr.bf16.mxu0 %v1302_v1 }
  0xb4   :  { %965 = vmatprep.mubr.msk.bf16.mxu0 %vm831_vm9, %v1304_v34  ;;  %v92_v37 = vpop.permute.xlu1 %91 }
  0xb5   :  { %v89_v38 = vpop.permute.xlu0 %88  ;;  %vm100_vm10 = vcmp.eq.s32.totalorder %v68_v31, %v92_v37 }
  0xb6   :  { %vm99_vm11 = vcmp.eq.s32.totalorder %v68_v31, %v89_v38  ;;  %992 = vmatpush3.bf16.msra.mxu0 %v1404_v11  ;;  %v1180_v38 = vld [vmem:[#allocation5 + $0x18] sm:$0xff]  }
  0xb7   :  { %vm833_vm12 = vmpackc.low %vm100_vm10, %vm99_vm11  ;;  %993 = vmatprep.subr.bf16.mxu0 %v1302_v1 }
  0xb9   :  { %966 = vmatmul.mubr.msk.bf16.gmra.mrb[4].mxu0 %vm833_vm12, %v1304_v34 }
  0xba   :  { %994 = vmatpush3.bf16.msra.mxu0 %v1419_v15  ;;  %1005 = vmatprep.mubr.msk.bf16.mxu0 %vm1303_vm0, %v1302_v1 }
  0xbb   :  { %995 = vmatprep.subr.bf16.mxu0 %v1302_v1 }
  0xbe   :  { %996 = vmatpush3.bf16.msra.mxu0 %v1426_v17 }
  0xbf   :  { %997 = vmatprep.subr.bf16.mxu0 %v1302_v1 }
  0xc2   :  { %998 = vmatpush3.bf16.msra.mxu0 %v1433_v19 }
  0xc3   :  { %999 = vmatprep.subr.bf16.mxu0 %v1302_v1 }
  0xc6   :  { %1000 = vmatpush3.bf16.msra.mxu0 %v1439_v21 }
  0xc7   :  { %1001 = vmatprep.subr.bf16.mxu0 %v1302_v1 }
  0xca   :  { %1002 = vmatpush3.bf16.msra.mxu0 %v1447_v23 }
  0xcb   :  { %1003 = vmatprep.subr.bf16.mxu0 %v1302_v1 }
  0xce   :  { %1004 = vmatpush3.bf16.msra.mxu0 %v1454_v25 }
  0xcf   :  { %1029 = vmatprep.subr.bf16.mxu0 %v1302_v1 }
 0x11d   :  { %v357_v39 = vpop.f32.mrb[0].mxu1 }
 0x11e   :  { %v987_v40 = vpop.f32.mrb[1].mxu1 }
 0x11f   :  { %v360_v41 = vpop.f32.mrb[2].mxu1 }
 0x120   :  { %v988_v42 = vpop.f32.mrb[3].mxu1 }
 0x184   :  { %v963_v44 = vpop.f32.mrb[0].mxu0 }
 0x185   :  { %v1502_v45 = vadd.f32 %v963_v44, %v818_v43  ;;  %v226_v46 = vpop.f32.mrb[1].mxu0 }
 0x186   :  { %v227_v47 = vadd.f32 %v818_v43, %v226_v46  ;;  %v964_v48 = vpop.f32.mrb[2].mxu0  ;;  %v1181_v46 = vld [vmem:[#allocation5 + $0x20] sm:$0xff]  }
 0x187   :  { %v1504_v49 = vadd.f32 %v964_v48, %v818_v43  ;;  %v229_v50 = vpop.f32.mrb[3].mxu0  ;;  %v1183_v48 = vld [vmem:[#allocation5 + $0x30] sm:$0xff]  }
 0x188   :  { %v363_v51 = vadd.f32 %v357_v39, %v227_v47  ;;  %v230_v52 = vadd.f32 %v818_v43, %v229_v50  ;;  %v1182_v47 = vld [vmem:[#allocation5 + $0x28] sm:$0xff]  }
 0x18a   :  { %1185 = vtanh.f32 %v363_v51 }
 0x18c   :  { %v967_v53 = vpop.f32.mrb[4].mxu0 }
 0x18d   :  { %v1506_v54 = vadd.f32 %v967_v53, %v818_v43  ;;  %v242_v55 = vpop.f32.mrb[5].mxu0 }
 0x18e   :  { %v1508_v56 = vadd.f32 %v818_v43, %v242_v55  ;;  %v968_v57 = vpop.f32.mrb[6].mxu0 }
 0x18f   :  { %v1510_v58 = vadd.f32 %v968_v57, %v818_v43  ;;  %v245_v59 = vpop.f32.mrb[7].mxu0 }
 0x190   :  { %v1512_v60 = vadd.f32 %v818_v43, %v245_v59 }
 0x194   :  { %v1186_v61 = vpop.eup %1185 }
 0x195   :  { %v365_v62 = vpack.c.bf16 %v1186_v61, %v1186_v61 }
 0x197   :  { %1006 = vmatmul.mubr.bf16.vlgmr.msra.gmra.mrb[8].mxu0 %v365_v62 }
 0x198   :  { %1030 = vmatpush3.bf16.msra.mxu0 %v1398_v9  ;;  %1045 = vmatprep.mubr.msk.bf16.mxu0 %vm1303_vm0, %v1302_v1 }
 0x199   :  { %1031 = vmatprep.subr.bf16.mxu0 %v1302_v1 }
 0x19c   :  { %1032 = vmatpush3.bf16.msra.mxu0 %v1404_v11 }
 0x19d   :  { %1033 = vmatprep.subr.bf16.mxu0 %v1302_v1 }
 0x1a0   :  { %1034 = vmatpush3.bf16.msra.mxu0 %v1419_v15 }
 0x1a1   :  { %1035 = vmatprep.subr.bf16.mxu0 %v1302_v1 }
 0x1a4   :  { %1036 = vmatpush3.bf16.msra.mxu0 %v1426_v17 }
 0x1a5   :  { %1037 = vmatprep.subr.bf16.mxu0 %v1302_v1 }
 0x1a8   :  { %1038 = vmatpush3.bf16.msra.mxu0 %v1433_v19 }
 0x1a9   :  { %1039 = vmatprep.subr.bf16.mxu0 %v1302_v1 }
 0x1ac   :  { %1040 = vmatpush3.bf16.msra.mxu0 %v1439_v21 }
 0x1ad   :  { %1041 = vmatprep.subr.bf16.mxu0 %v1302_v1 }
 0x1b0   :  { %1042 = vmatpush3.bf16.msra.mxu0 %v1447_v23 }
 0x1b1   :  { %1043 = vmatprep.subr.bf16.mxu0 %v1302_v1 }
 0x1b4   :  { %1044 = vmatpush3.bf16.msra.mxu0 %v1454_v25 }
 0x1b5   :  { %1069 = vmatprep.subr.bf16.mxu0 %v1302_v1 }
 0x26a   :  { %v400_v63 = vpop.f32.mrb[8].mxu0 }
 0x26b   :  { %v406_v0 = vadd.f32 %v400_v63, %v230_v52  ;;  %v1007_v2 = vpop.f32.mrb[9].mxu0 }
 0x26c   :  { %v403_v3 = vpop.f32.mrb[10].mxu0 }
 0x26d   :  { %1187 = vtanh.f32 %v406_v0  ;;  %v1008_v4 = vpop.f32.mrb[11].mxu0 }
 0x277   :  { %v1188_v5 = vpop.eup %1187 }
 0x278   :  { %v408_v6 = vpack.c.bf16 %v1188_v5, %v1188_v5 }
 0x27a   :  { %1026 = vmatmul.mubr.bf16.vlgmr.msra.gmra.mrb[4].mxu1 %v408_v6 }
 0x27b   :  { %1050 = vmatpush3.bf16.msra.mxu1 %v1398_v9  ;;  %1065 = vmatprep.mubr.msk.bf16.mxu1 %vm1303_vm0, %v1302_v1 }
 0x27c   :  { %1051 = vmatprep.subr.bf16.mxu1 %v1302_v1 }
 0x27f   :  { %1052 = vmatpush3.bf16.msra.mxu1 %v1404_v11 }
 0x280   :  { %1053 = vmatprep.subr.bf16.mxu1 %v1302_v1 }
 0x283   :  { %1054 = vmatpush3.bf16.msra.mxu1 %v1419_v15 }
 0x284   :  { %1055 = vmatprep.subr.bf16.mxu1 %v1302_v1 }
 0x287   :  { %1056 = vmatpush3.bf16.msra.mxu1 %v1426_v17 }
 0x288   :  { %1057 = vmatprep.subr.bf16.mxu1 %v1302_v1 }
 0x28b   :  { %1058 = vmatpush3.bf16.msra.mxu1 %v1433_v19 }
 0x28c   :  { %1059 = vmatprep.subr.bf16.mxu1 %v1302_v1 }
 0x28f   :  { %1060 = vmatpush3.bf16.msra.mxu1 %v1439_v21 }
 0x290   :  { %1061 = vmatprep.subr.bf16.mxu1 %v1302_v1 }
 0x293   :  { %1062 = vmatpush3.bf16.msra.mxu1 %v1447_v23 }
 0x294   :  { %1063 = vmatprep.subr.bf16.mxu1 %v1302_v1 }
 0x297   :  { %1064 = vmatpush3.bf16.msra.mxu1 %v1454_v25 }
 0x298   :  { %1089 = vmatprep.subr.bf16.mxu1 %v1302_v1 }
 0x34d   :  { %v443_v7 = vpop.f32.mrb[4].mxu1 }
 0x34e   :  { %v449_v8 = vadd.f32 %v443_v7, %v1502_v45  ;;  %v1027_v10 = vpop.f32.mrb[5].mxu1 }
 0x34f   :  { %v446_v12 = vpop.f32.mrb[6].mxu1 }
 0x350   :  { %1189 = vtanh.f32 %v449_v8  ;;  %v1028_v13 = vpop.f32.mrb[7].mxu1 }
 0x35a   :  { %v1190_v14 = vpop.eup %1189 }
 0x35b   :  { %v451_v16 = vpack.c.bf16 %v1190_v14, %v1190_v14 }
 0x35d   :  { %1046 = vmatmul.mubr.bf16.vlgmr.msra.gmra.mrb[12].mxu0 %v451_v16 }
 0x35e   :  { %1070 = vmatpush3.bf16.msra.mxu0 %v1398_v9  ;;  %1085 = vmatprep.mubr.msk.bf16.mxu0 %vm1303_vm0, %v1302_v1 }
 0x35f   :  { %1071 = vmatprep.subr.bf16.mxu0 %v1302_v1 }
 0x362   :  { %1072 = vmatpush3.bf16.msra.mxu0 %v1404_v11 }
 0x363   :  { %1073 = vmatprep.subr.bf16.mxu0 %v1302_v1 }
 0x366   :  { %1074 = vmatpush3.bf16.msra.mxu0 %v1419_v15 }
 0x367   :  { %1075 = vmatprep.subr.bf16.mxu0 %v1302_v1 }
 0x36a   :  { %1076 = vmatpush3.bf16.msra.mxu0 %v1426_v17 }
 0x36b   :  { %1077 = vmatprep.subr.bf16.mxu0 %v1302_v1 }
 0x36e   :  { %1078 = vmatpush3.bf16.msra.mxu0 %v1433_v19 }
 0x36f   :  { %1079 = vmatprep.subr.bf16.mxu0 %v1302_v1 }
 0x372   :  { %1080 = vmatpush3.bf16.msra.mxu0 %v1439_v21 }
 0x373   :  { %1081 = vmatprep.subr.bf16.mxu0 %v1302_v1 }
 0x376   :  { %1082 = vmatpush3.bf16.msra.mxu0 %v1447_v23 }
 0x377   :  { %1083 = vmatprep.subr.bf16.mxu0 %v1302_v1 }
 0x37a   :  { %1084 = vmatpush3.bf16.msra.mxu0 %v1454_v25 }
 0x37b   :  { %1109 = vmatprep.subr.bf16.mxu0 %v1302_v1 }
 0x430   :  { %v486_v18 = vpop.f32.mrb[12].mxu0 }
 0x431   :  { %v492_v20 = vadd.f32 %v486_v18, %v1504_v49  ;;  %v1047_v22 = vpop.f32.mrb[13].mxu0  ;;  %v1184_v49 = vld [vmem:[#allocation5 + $0x38] sm:$0xff]  }
 0x432   :  { %v489_v24 = vpop.f32.mrb[14].mxu0 }
 0x433   :  { %1191 = vtanh.f32 %v492_v20  ;;  %v1048_v26 = vpop.f32.mrb[15].mxu0 }
 0x43d   :  { %v1192_v27 = vpop.eup %1191 }
 0x43e   :  { %v494_v28 = vpack.c.bf16 %v1192_v27, %v1192_v27 }
 0x440   :  { %1066 = vmatmul.mubr.bf16.vlgmr.msra.gmra.mrb[8].mxu1 %v494_v28 }
 0x441   :  { %1090 = vmatpush3.bf16.msra.mxu1 %v1398_v9  ;;  %1105 = vmatprep.mubr.msk.bf16.mxu1 %vm1303_vm0, %v1302_v1 }
 0x442   :  { %1091 = vmatprep.subr.bf16.mxu1 %v1302_v1 }
 0x445   :  { %1092 = vmatpush3.bf16.msra.mxu1 %v1404_v11 }
 0x446   :  { %1093 = vmatprep.subr.bf16.mxu1 %v1302_v1 }
 0x449   :  { %1094 = vmatpush3.bf16.msra.mxu1 %v1419_v15 }
 0x44a   :  { %1095 = vmatprep.subr.bf16.mxu1 %v1302_v1 }
 0x44d   :  { %1096 = vmatpush3.bf16.msra.mxu1 %v1426_v17 }
 0x44e   :  { %1097 = vmatprep.subr.bf16.mxu1 %v1302_v1 }
 0x451   :  { %1098 = vmatpush3.bf16.msra.mxu1 %v1433_v19 }
 0x452   :  { %1099 = vmatprep.subr.bf16.mxu1 %v1302_v1 }
 0x455   :  { %1100 = vmatpush3.bf16.msra.mxu1 %v1439_v21 }
 0x456   :  { %1101 = vmatprep.subr.bf16.mxu1 %v1302_v1 }
 0x459   :  { %1102 = vmatpush3.bf16.msra.mxu1 %v1447_v23 }
 0x45a   :  { %1103 = vmatprep.subr.bf16.mxu1 %v1302_v1 }
 0x45d   :  { %1104 = vmatpush3.bf16.msra.mxu1 %v1454_v25 }
 0x45e   :  { %1129 = vmatprep.subr.bf16.mxu1 %v1302_v1 }
 0x513   :  { %v529_v29 = vpop.f32.mrb[8].mxu1 }
 0x514   :  { %v535_v30 = vadd.f32 %v529_v29, %v1508_v56  ;;  %v1067_v31 = vpop.f32.mrb[9].mxu1 }
 0x515   :  { %v532_v32 = vpop.f32.mrb[10].mxu1 }
 0x516   :  { %1193 = vtanh.f32 %v535_v30  ;;  %v1068_v33 = vpop.f32.mrb[11].mxu1 }
 0x520   :  { %v1194_v34 = vpop.eup %1193 }
 0x521   :  { %v537_v35 = vpack.c.bf16 %v1194_v34, %v1194_v34 }
 0x523   :  { %1086 = vmatmul.mubr.bf16.vlgmr.msra.gmra.mrb[16].mxu0 %v537_v35 }
 0x524   :  { %1110 = vmatpush3.bf16.msra.mxu0 %v1398_v9  ;;  %1125 = vmatprep.mubr.msk.bf16.mxu0 %vm1303_vm0, %v1302_v1 }
 0x525   :  { %1111 = vmatprep.subr.bf16.mxu0 %v1302_v1 }
 0x528   :  { %1112 = vmatpush3.bf16.msra.mxu0 %v1404_v11 }
 0x529   :  { %1113 = vmatprep.subr.bf16.mxu0 %v1302_v1 }
 0x52c   :  { %1114 = vmatpush3.bf16.msra.mxu0 %v1419_v15 }
 0x52d   :  { %1115 = vmatprep.subr.bf16.mxu0 %v1302_v1 }
 0x530   :  { %1116 = vmatpush3.bf16.msra.mxu0 %v1426_v17 }
 0x531   :  { %1117 = vmatprep.subr.bf16.mxu0 %v1302_v1 }
 0x534   :  { %1118 = vmatpush3.bf16.msra.mxu0 %v1433_v19 }
 0x535   :  { %1119 = vmatprep.subr.bf16.mxu0 %v1302_v1 }
 0x538   :  { %1120 = vmatpush3.bf16.msra.mxu0 %v1439_v21  ;;  %v1177_v21 = vld [vmem:[#allocation5] sm:$0xff]  }
 0x539   :  { %1121 = vmatprep.subr.bf16.mxu0 %v1302_v1 }
 0x53c   :  { %1122 = vmatpush3.bf16.msra.mxu0 %v1447_v23  ;;  %v1178_v23 = vld [vmem:[#allocation5 + $0x8] sm:$0xff]  }
 0x53d   :  { %1123 = vmatprep.subr.bf16.mxu0 %v1302_v1 }
 0x540   :  { %1124 = vmatpush3.bf16.msra.mxu0 %v1454_v25  ;;  %v1179_v25 = vld [vmem:[#allocation5 + $0x10] sm:$0xff]  }
 0x5f6   :  { %v572_v9 = vpop.f32.mrb[16].mxu0 }
 0x5f7   :  { %v578_v11 = vadd.f32 %v572_v9, %v1512_v60  ;;  %v1087_v15 = vpop.f32.mrb[17].mxu0 }
 0x5f8   :  { %v575_v17 = vpop.f32.mrb[18].mxu0 }
 0x5f9   :  { %1195 = vtanh.f32 %v578_v11  ;;  %v1088_v36 = vpop.f32.mrb[19].mxu0 }
 0x603   :  { %v1196_v19 = vpop.eup %1195 }
 0x604   :  { %v580_v37 = vpack.c.bf16 %v1196_v19, %v1196_v19 }
 0x606   :  { %1106 = vmatmul.mubr.bf16.vlgmr.msra.gmra.mrb[12].mxu1 %v580_v37 }
 0x607   :  { %1145 = vmatprep.mubr.msk.bf16.mxu1 %vm1303_vm0, %v1302_v1  ;;  %1130 = vmatpush3.bf16.msra.mxu1 %v1177_v21 }
 0x608   :  { %1131 = vmatprep.subr.bf16.mxu1 %v1302_v1 }
 0x60b   :  { %1132 = vmatpush3.bf16.msra.mxu1 %v1178_v23 }
 0x60c   :  { %1133 = vmatprep.subr.bf16.mxu1 %v1302_v1 }
 0x60f   :  { %1134 = vmatpush3.bf16.msra.mxu1 %v1179_v25 }
 0x610   :  { %1135 = vmatprep.subr.bf16.mxu1 %v1302_v1 }
 0x613   :  { %1136 = vmatpush3.bf16.msra.mxu1 %v1180_v38 }
 0x614   :  { %1137 = vmatprep.subr.bf16.mxu1 %v1302_v1 }
 0x617   :  { %1138 = vmatpush3.bf16.msra.mxu1 %v1181_v46 }
 0x618   :  { %1139 = vmatprep.subr.bf16.mxu1 %v1302_v1 }
 0x61b   :  { %1140 = vmatpush3.bf16.msra.mxu1 %v1182_v47 }
 0x61c   :  { %1141 = vmatprep.subr.bf16.mxu1 %v1302_v1 }
 0x61f   :  { %1142 = vmatpush3.bf16.msra.mxu1 %v1183_v48 }
 0x620   :  { %1143 = vmatprep.subr.bf16.mxu1 %v1302_v1 }
 0x623   :  { %1144 = vmatpush3.bf16.msra.mxu1 %v1184_v49 }
 0x6d9   :  { %v615_v39 = vpop.f32.mrb[12].mxu1 }
 0x6da   :  { %v621_v40 = vadd.f32 %v615_v39, %v1506_v54  ;;  %v1107_v41 = vpop.f32.mrb[13].mxu1 }
 0x6db   :  { %v618_v42 = vpop.f32.mrb[14].mxu1 }
 0x6dc   :  { %1197 = vtanh.f32 %v621_v40  ;;  %v1108_v43 = vpop.f32.mrb[15].mxu1 }
 0x6e6   :  { %v1198_v44 = vpop.eup %1197 }
 0x6e7   :  { %v623_v45 = vpack.c.bf16 %v1198_v44, %v1198_v44 }
 0x6e9   :  { %1126 = vmatmul.mubr.bf16.vlgmr.msra.gmra.mrb[20].mxu0 %v623_v45 }
 0x7bc   :  { %v658_v50 = vpop.f32.mrb[20].mxu0 }
 0x7bd   :  { %v664_v51 = vadd.f32 %v658_v50, %v1510_v58  ;;  %v1127_v52 = vpop.f32.mrb[21].mxu0 }
 0x7be   :  { %v661_v53 = vpop.f32.mrb[22].mxu0 }
 0x7bf   :  { %1199 = vtanh.f32 %v664_v51  ;;  %v1128_v54 = vpop.f32.mrb[23].mxu0 }
 0x7c9   :  { %v1200_v55 = vpop.eup %1199 }
 0x7ca   :  { %666 = vst [vmem:[#allocation8] sm:$0xff] %v1200_v55  ;;  %v667_v56 = vpack.c.bf16 %v1200_v55, %v1200_v55 }
 0x7cc   :  { %1146 = vmatmul.mubr.bf16.vlgmr.msra.gmra.mrb[16].mxu1 %v667_v56 }
 0x7cd   :  { %1256 = shalt.err (!%p1253_p6)
}
 0x7ce   :  { %s1257_s20 = scalar_lea.hbm %s1653_s8, 128 }
 0x7cf   :  { %p1258_p7 = scmp.ne.s32.totalorder %s1653_s8, %s1257_s20  ;;  %p1261_p8 = scmp.lt.u32.totalorder %s1257_s20, %s1653_s8 }
 0x7d1   :  { %p1263_p9 = pnand %p1261_p8, %p1258_p7 }
 0x7d3   :  { %1266 = shalt.err (!%p1263_p9)
}
 0x7d4   :  { %799 = dma.vmem_to_hbm [thread:$0]  %s797_s16, 128, %s1653_s8, [#allocation9]   ;;  %v843_v1 = vld [vmem:[%s1651_s6] ss:$0 sm:$0xff] }
 0x7d5   :  { %s1306_s3 = smov [#allocation7]  }
 0x7d6   :  { %s786_s28 = sshll.u32 %s1306_s3, 4  ;;  %s787_s28 = int_to_ptr.vmem [resolvable:$true] %s786_s28 }
 0x7d7   :  { %s1267_s0 = scalar_lea.vmem %s787_s28, 128  ;;  %p1272_p11 = scmp.lt.s32.totalorder %s787_s28, %s787_s28 }
 0x7d8   :  { %p1268_p10 = scmp.ne.s32.totalorder %s787_s28, %s1267_s0  ;;  %p1273_p12 = scmp.lt.s32.totalorder %s1267_s0, %s1267_s0 }
 0x7da   :  { %p1274_p13 = por %p1273_p12, %p1272_p11 }
 0x7dc   :  { %p1275_p0 = pnand %p1274_p13, %p1268_p10 }
 0x89f   :  { %v773_v57 = vpop.f32.mrb[16].mxu1 }
 0x8a0   :  { %v774_v58 = vadd.f32 %v843_v1, %v773_v57  ;;  %v1147_v59 = vpop.f32.mrb[17].mxu1 }
 0x8a1   :  { %v776_v60 = vpop.f32.mrb[18].mxu1 }
 0x8a2   :  { %779 = vst [vmem:[#allocation7] sm:$0xff] %v774_v58  ;;  %v1148_v61 = vpop.f32.mrb[19].mxu1 }
 0x8a3   :  { %1278 = shalt.err (!%p1275_p0)
}
 0x8a4   :  { %s1279_s6 = scalar_lea.hbm %s1652_s7, 128 }
 0x8a5   :  { %p1280_p1 = scmp.ne.s32.totalorder %s1652_s7, %s1279_s6  ;;  %p1283_p2 = scmp.lt.u32.totalorder %s1279_s6, %s1652_s7 }
 0x8a7   :  { %p1285_p3 = pnand %p1283_p2, %p1280_p1 }
 0x8a9   :  { %1288 = shalt.err (!%p1285_p3)
}
 0x8aa   :  { %789 = dma.vmem_to_hbm [thread:$0]  %s787_s28, 128, %s1652_s7, [#allocation4]  }
 0x8ab   :  { %1293 = dma.done.wait [#allocation4], 128  }
 0x8ac   :  { %1294 = vsyncadd [#allocation4], 4294967168 }
 0x8ad   :  { %1295 = dma.done.wait [#allocation9], 128  }
 0x8ae   :  { %1296 = vsyncadd [#allocation9], 4294967168 }
 0x8af   :  { %806 = vsyncpa [#allocation3], 1 }
 0x8b0   :  { %807 = vsyncpa [#allocation6], 1 }
 0x8b1   :  { %808 = vsyncpa [#allocation4], 1 }
 0x8b2   :  { %809 = vsyncpa [#allocation9], 1 }

</bundles_post_ra>
